<compile_context>
chip_gen: v5e
topology: v5e:2x2
jax: 0.10.0
libtpu: 0.0.40
codegen_flags: <defaults>
</compile_context>

<pallas_src>
import math

import jax
import jax.numpy as jnp
from jax.experimental import pallas as pl
from jax.experimental.pallas import tpu as pltpu


def _build_pe_table(max_len: int, d_model: int) -> jnp.ndarray:
    """Reference sinusoidal table (plain JAX), shape (max_len, d_model), float32."""
    position = jnp.arange(max_len, dtype=jnp.float32)[:, None]
    div_term = jnp.exp(
        jnp.arange(0, d_model, 2, dtype=jnp.float32) * (-math.log(10000.0) / d_model)
    )
    angles = position * div_term
    pe = jnp.zeros((max_len, d_model), dtype=jnp.float32)
    pe = pe.at[:, 0::2].set(jnp.sin(angles))
    pe = pe.at[:, 1::2].set(jnp.cos(angles)[:, : d_model // 2])
    return pe


def _make_pe_params(batch: int, d_model: int) -> jnp.ndarray:
    """(2, batch*d_model) f32 parameter block for the flattened (S, B*D) layout.

    Row 0: div_full[j]  = div_term[(j % D) // 2]
    Row 1: phase[j]     = ((j % D) % 2) * pi/2      (so cos == sin(. + pi/2))
    """
    half = (d_model + 1) // 2
    div_term = jnp.exp(
        jnp.arange(0, d_model, 2, dtype=jnp.float32) * (-math.log(10000.0) / d_model)
    )
    div_full = jnp.repeat(div_term, 2)[:d_model]                                 # (D,)
    phase = jnp.tile(jnp.array([0.0, math.pi / 2], jnp.float32), half)[:d_model]  # (D,)
    params = jnp.stack([div_full, phase], axis=0)                                 # (2, D)
    return jnp.tile(params, (1, batch))                                           # (2, B*D)


def _pe_add_kernel(params_ref, x_ref, o_ref):
    # params_ref: (2, B*D) f32, VMEM-resident across the whole grid.
    # x_ref / o_ref: (ts, B*D) activation tile (lane- and sublane-dense).
    ts = x_ref.shape[0]
    base = pl.program_id(0) * ts                                        # global seq offset
    pos = (jax.lax.broadcasted_iota(jnp.int32, x_ref.shape, 0) + base).astype(jnp.float32)
    # cos(x) == sin(x + pi/2): one transcendental per element, no parity select.
    pe = jnp.sin(pos * params_ref[0:1, :] + params_ref[1:2, :])
    o_ref[...] = (x_ref[...].astype(jnp.float32) + pe).astype(o_ref.dtype)
    # TODO(synk): Dropout(p=0.1) is identity in eval mode; training-mode dropout
    # (pltpu.prng_random_bits mask + 1/(1-p) scaling) is not applied here.


def _cdiv(a: int, b: int) -> int:
    return -(-a // b)


def _pick_seq_tile(S: int, row_bytes: int, max_tile_bytes: int) -> int:
    """Full S if a single tile fits; otherwise an 8-aligned tile under budget,
    rebalanced so the cdiv grid blocks are roughly equal.  In the multi-tile
    branch the grid always has >= 2 steps (lets v7x shard the 'parallel' seq
    axis across its 2 TensorCores)."""
    if S * row_bytes <= max_tile_bytes:
        return S
    ts = max(8, (max_tile_bytes // row_bytes) // 8 * 8)
    n = _cdiv(S, ts)
    return max(8, _cdiv(_cdiv(S, n), 8) * 8)   # <= ts, so still under budget


def positional_encoding(x: jnp.ndarray, *, max_tile_bytes: int | None = None) -> jnp.ndarray:
    """x: (S, B, D); returns x + pe[:S] (eval-mode dropout == identity)."""
    S, B, D = x.shape
    BD = B * D
    x2 = x.reshape(S, BD)                      # free: row-major metadata change
    params = _make_pe_params(B, D)             # (2, BD) f32

    itemsize = jnp.dtype(x.dtype).itemsize
    row_bytes = BD * itemsize

    # Generation-aware budgets: ~1/8 of physical VMEM per tile; cap the scoped
    # VMEM limit at 3/4 of physical VMEM to leave Mosaic headroom.
    try:
        vmem_cap = int(pltpu.get_tpu_info().vmem_capacity_bytes)
    except Exception:  # conservative fallback if the query is unavailable
        vmem_cap = 64 << 20
    if max_tile_bytes is None:
        max_tile_bytes = max(1 << 20, vmem_cap // 8)

    ts = _pick_seq_tile(S, row_bytes, max_tile_bytes)
    grid = (_cdiv(S, ts),)

    tile_bytes = ts * row_bytes
    # Double-buffered in + out tiles, resident param block, ~2 MiB slack.
    vmem_limit = 4 * tile_bytes + 4 * (2 * BD * 4) + (2 << 20)
    vmem_limit = int(min(max(vmem_limit, 16 << 20), vmem_cap * 3 // 4))

    out2 = pl.pallas_call(
        _pe_add_kernel,
        out_shape=jax.ShapeDtypeStruct((S, BD), x.dtype),
        grid_spec=pltpu.PrefetchScalarGridSpec(
            num_scalar_prefetch=0,
            grid=grid,
            in_specs=[
                # Resident parameter block: constant index_map -> no per-step DMA.
                pl.BlockSpec((2, BD), lambda i: (0, 0)),
                pl.BlockSpec((ts, BD), lambda i: (i, 0)),
            ],
            out_specs=pl.BlockSpec((ts, BD), lambda i: (i, 0)),
        ),
        compiler_params=pltpu.CompilerParams(
            dimension_semantics=("parallel",),
            vmem_limit_bytes=vmem_limit,
        ),
    )(params, x2)
    return out2.reshape(S, B, D)


if __name__ == "__main__":
    key = jax.random.PRNGKey(0)
    k1, k2 = jax.random.split(key)

    # 1) Tutorial-sized shape: seq=8, batch=2, d_model=32 (single block).
    S, B, D = 8, 2, 32
    x = jax.random.normal(k1, (S, B, D), dtype=jnp.float32)
    out = jax.block_until_ready(positional_encoding(x))
    ref = x + _build_pe_table(S, D)[:, None, :]
    assert out.shape == (S, B, D)
    assert jnp.allclose(out, ref, atol=1e-5, rtol=1e-5)

    # 2) Multi-tile case with a non-divisible sequence length to exercise the
    #    cdiv grid, the padded edge block, and the per-step position offset.
    S2, B2, D2 = 200, 4, 128
    x2 = jax.random.normal(k2, (S2, B2, D2), dtype=jnp.float32)
    out2 = jax.block_until_ready(positional_encoding(x2, max_tile_bytes=128 << 10))
    ref2 = x2 + _build_pe_table(S2, D2)[:, None, :]
    assert out2.shape == (S2, B2, D2)
    assert jnp.allclose(out2, ref2, atol=1e-4, rtol=1e-4)

    print("KERNEL_OK")
</pallas_src>

<mosaic_0001>
module attributes {stable_mosaic.version = 11 : i64} {
  func.func @_pe_add_kernel(%arg0: i32, %arg1: memref<2x64xf32, #tpu.memory_space<vmem>>, %arg2: memref<8x64xf32, #tpu.memory_space<vmem>>, %arg3: memref<8x64xf32, #tpu.memory_space<vmem>>) attributes {dimension_semantics = [#tpu.dimension_semantics<parallel>], iteration_bounds = array<i64: 1>, scalar_prefetch = 0 : i64, scratch_operands = 0 : i64, tpu.core_type = #tpu.core_type<tc>, window_params = [{pipeline_mode = #tpu.pipeline_mode<synchronous>, transform_indices = @transform_0, window_bounds = array<i64: 2, 64>}, {transform_indices = @transform_1, window_bounds = array<i64: 8, 64>}, {transform_indices = @transform_2, window_bounds = array<i64: 8, 64>}]} {
    %c8_i32 = arith.constant 8 : i32
    %0 = arith.muli %arg0, %c8_i32 : i32
    %1 = tpu.iota {dimensions = array<i32: 0>} : vector<8x64xi32>
    %2 = vector.broadcast %0 : i32 to vector<8x64xi32>
    %3 = arith.addi %1, %2 : vector<8x64xi32>
    %4 = arith.sitofp %3 : vector<8x64xi32> to vector<8x64xf32>
    %c0 = arith.constant 0 : index
    %c0_0 = arith.constant 0 : index
    %5 = vector.load %arg1[%c0, %c0_0] : memref<2x64xf32, #tpu.memory_space<vmem>>, vector<1x64xf32>
    %6 = vector.broadcast %5 : vector<1x64xf32> to vector<8x64xf32>
    %7 = arith.mulf %4, %6 : vector<8x64xf32>
    %c1 = arith.constant 1 : index
    %c0_1 = arith.constant 0 : index
    %8 = vector.load %arg1[%c1, %c0_1] : memref<2x64xf32, #tpu.memory_space<vmem>>, vector<1x64xf32>
    %9 = vector.broadcast %8 : vector<1x64xf32> to vector<8x64xf32>
    %10 = arith.addf %7, %9 : vector<8x64xf32>
    %11 = math.sin %10 : vector<8x64xf32>
    %c0_2 = arith.constant 0 : index
    %c0_3 = arith.constant 0 : index
    %12 = vector.load %arg2[%c0_2, %c0_3] : memref<8x64xf32, #tpu.memory_space<vmem>>, vector<8x64xf32>
    %13 = arith.addf %12, %11 : vector<8x64xf32>
    %c0_4 = arith.constant 0 : index
    %c0_5 = arith.constant 0 : index
    %14 = vector.load %arg3[%c0_4, %c0_5] : memref<8x64xf32, #tpu.memory_space<vmem>>, vector<8x64xf32>
    tpu.vector_store %arg3[%c0_4, %c0_5], %13 {strides = array<i32>} : memref<8x64xf32, #tpu.memory_space<vmem>>, vector<8x64xf32>,
    return
  }
  func.func @transform_0(%arg0: i32) -> (i32, i32) {
    %c0_i32 = arith.constant 0 : i32
    %c0_i32_0 = arith.constant 0 : i32
    %c0_i32_1 = arith.constant 0 : i32
    return %c0_i32, %c0_i32_0 : i32, i32
  }
  func.func @transform_1(%arg0: i32) -> (i32, i32) {
    %c0_i32 = arith.constant 0 : i32
    %c0_i32_0 = arith.constant 0 : i32
    return %arg0, %c0_i32 : i32, i32
  }
  func.func @transform_2(%arg0: i32) -> (i32, i32) {
    %c0_i32 = arith.constant 0 : i32
    %c0_i32_0 = arith.constant 0 : i32
    return %arg0, %c0_i32 : i32, i32
  }
}

</mosaic_0001>

<bundles_post_ra>
// kernel: tpu_custom_call.1
= control target key start
LH: loop header
LB: loop body
LE: loop exit
PB: predicated region body
PF: predicated region fallthrough
CT: control target
= control target key end

     0   :  { %7 = vsyncpa [#allocation3], 0  ;;  %s402_s0 = inlined_call_operand.hbm [shape: f32[2,64], index: 0, kind: input, shape index: {}]   ;;  %s403_s1 = inlined_call_operand.hbm [shape: f32[8,64], index: 1, kind: input, shape index: {}]   ;;  %s404_s2 = inlined_call_operand.hbm [shape: f32[8,64], index: 2, kind: output, shape index: {}]  }
   0x1   :  { %8 = vsyncpa [#allocation6], 0 }
   0x2   :  { %9 = vsyncpa [#allocation4], 0  ;;  %s15_s11 = sshll.u32 %s402_s0, 4  ;;  %s322_s12 = smov [#allocation2]   ;;  %s16_s11 = int_to_ptr.hbm [resolvable:$true] %s15_s11 }
   0x3   :  { %s17_s13 = sshll.u32 %s322_s12, 4  ;;  %s26_s16 = sshll.u32 %s403_s1, 4  ;;  %s18_s13 = int_to_ptr.vmem [resolvable:$true] %s17_s13  ;;  %s27_s16 = int_to_ptr.hbm [resolvable:$true] %s26_s16 }
   0x4   :  { %20 = dma.hbm_to_vmem [thread:$0]  %s16_s11, 32, %s18_s13, [#allocation3]  }
   0x5   :  { %s323_s17 = smov [#allocation5]  }
   0x6   :  { %s28_s18 = sshll.u32 %s323_s17, 4  ;;  %s29_s18 = int_to_ptr.vmem [resolvable:$true] %s28_s18 }
   0x7   :  { %31 = dma.hbm_to_vmem [thread:$0]  %s27_s16, 128, %s29_s18, [#allocation6]  }
   0x8   :  { %316 = dma.done.wait [#allocation3], 32  }
   0x9   :  { %317 = vsyncadd [#allocation3], 4294967264 }
   0xa   :  { %318 = dma.done.wait [#allocation6], 128  }
   0xb   :  { %319 = vsyncadd [#allocation6], 4294967168  ;;  %v41_v0 = vlaneseq  ;;  %v242_v3 = vld [vmem:[#allocation2] ss:$0 sm:$0xff]  ;;  %v243_v4 = vld [vmem:[#allocation2 + $0x1] ss:$0 sm:$0xff] }
   0xc   :  { %v324_v18 = vmov 683565275   ;;  %v325_v20 = vmov 2475754826   ;;  %v326_v22 = vmov 2131351028  }
   0xd   :  { %v42_v1 = vshrl.u32 %v41_v0, 7  ;;  %v327_v24 = vmov 2102212464   ;;  %v328_v26 = vmov 920167782   ;;  %s331_s0 = smov [#allocation7]  }
   0xe   :  { %v329_v32 = vmov 1326507024   ;;  %s216_s1 = sshll.u32 %s331_s0, 4  ;;  %s218_s21 = sshll.u32 %s404_s2, 4  ;;  %s217_s1 = int_to_ptr.vmem [resolvable:$true] %s216_s1  ;;  %s219_s21 = int_to_ptr.hbm [resolvable:$true] %s218_s21 }
   0xf   :  { %v45_v2 = vcvt.s32.f32 %v42_v1 }
  0x11   :  { %v48_v5 = vmul.f32 %v242_v3, %v45_v2 }
  0x13   :  { %v353_v6 = vadd.f32 %v243_v4, %v48_v5 }
  0x15   :  { %v55_v7 = vand.u32 2139095040, %v353_v6  ;;  %v52_v9 = vand.u32 2147483647, %v353_v6  ;;  %vm54_vm12 = vcmp.lt.s32.totalorder %v353_v6, 0 }
  0x17   :  { %v56_v8 = vshrl.u32 %v55_v7, 23  ;;  %v59_v12 = vand.u32 8388607, %v52_v9  ;;  %v330_v7 = vmov 0   ;;  %vm53_vm13 = vcmp.le.f32.partialorder %v52_v9, 0.7853982 }
  0x19   :  { %v229_v10 = vadd.s32 4294967169, %v56_v8  ;;  %v60_v15 = vor.u32 8388608, %v59_v12 }
  0x1b   :  { %v62_v11 = vadd.s32 1, %v229_v10  ;;  %v362_v34 = vshll.u32 %v60_v15, 8 }
  0x1d   :  { %vm63_vm0 = vcmp.gt.s32.totalorder %v62_v11, 0  ;;  %v101_v46 = vand.u32 65535, %v362_v34  ;;  %v102_v47 = vshrl.u32 %v362_v34, 16 }
  0x1e   :  { %v64_v13 = vsel %vm63_vm0, %v62_v11, 0 }
  0x1f   :  { %v66_v14 = vand.u32 31, %v64_v13  ;;  %v359_v16 = vshrl.u32 %v64_v13, 5 }
  0x21   :  { %v67_v17 = vsub.s32 32, %v66_v14  ;;  %v69_v19 = vshll.u32 %v324_v18, %v66_v14  ;;  %v72_v21 = vshll.u32 %v325_v20, %v66_v14  ;;  %v75_v23 = vshll.u32 %v326_v22, %v66_v14 }
  0x22   :  { %v78_v25 = vshll.u32 %v327_v24, %v66_v14  ;;  %v81_v27 = vshll.u32 %v328_v26, %v66_v14  ;;  %vm84_vm1 = vcmp.lt.s32.totalorder %v359_v16, 1  ;;  %vm87_vm2 = vcmp.lt.s32.totalorder %v359_v16, 4 }
  0x23   :  { %v70_v28 = vshrl.u32 %v325_v20, %v67_v17  ;;  %v73_v29 = vshrl.u32 %v326_v22, %v67_v17  ;;  %v76_v30 = vshrl.u32 %v327_v24, %v67_v17  ;;  %v79_v31 = vshrl.u32 %v328_v26, %v67_v17 }
  0x24   :  { %v82_v33 = vshrl.u32 %v329_v32, %v67_v17  ;;  %vm86_vm3 = vcmp.lt.s32.totalorder %v359_v16, 3  ;;  %vm85_vm4 = vcmp.lt.s32.totalorder %v359_v16, 2  ;;  %v68_v54 = vshrl.u32 %v324_v18, %v67_v17 }
  0x25   :  { %v71_v35 = vor.u32 %v70_v28, %v69_v19  ;;  %v74_v36 = vor.u32 %v73_v29, %v72_v21  ;;  %v77_v37 = vor.u32 %v76_v30, %v75_v23  ;;  %v80_v38 = vor.u32 %v79_v31, %v78_v25 }
  0x26   :  { %v83_v39 = vor.u32 %v82_v33, %v81_v27 }
  0x27   :  { %v92_v40 = vsel %vm84_vm1, %v71_v35, %v74_v36  ;;  %v96_v41 = vsel %vm84_vm1, %v74_v36, %v77_v37  ;;  %v93_v42 = vsel %vm87_vm2, %v80_v38, 920167782  ;;  %v88_v3 = vsel %vm84_vm1, %v68_v54, %v71_v35 }
  0x28   :  { %v97_v43 = vsel %vm87_vm2, %v83_v39, 1326507024  ;;  %v94_v44 = vsel %vm86_vm3, %v77_v37, %v93_v42  ;;  %v89_v5 = vsel %vm87_vm2, %v77_v37, 2102212464  ;;  %vm195_vm1 = vweird.f32 %v353_v6 }
  0x29   :  { %v98_v45 = vsel %vm86_vm3, %v80_v38, %v97_v43  ;;  %v95_v48 = vsel %vm85_vm4, %v92_v40, %v94_v44  ;;  %v90_v18 = vsel %vm86_vm3, %v74_v36, %v89_v5  ;;  %vm209_vm2 = vcmask 523264  }
  0x2a   :  { %v99_v49 = vsel %vm85_vm4, %v96_v41, %v98_v45  ;;  %v125_v52 = vand.u32 65535, %v95_v48  ;;  %v126_v53 = vshrl.u32 %v95_v48, 16  ;;  %v91_v26 = vsel %vm85_vm4, %v88_v3, %v90_v18  ;;  %v207_v18 = vld [vmem:[#allocation5] sm:$0xff] }
  0x2b   :  { %v103_v50 = vand.u32 65535, %v99_v49  ;;  %v104_v51 = vshrl.u32 %v99_v49, 16  ;;  %v145_v30 = vmul.u32 %v362_v34, %v91_v26 }
  0x2c   :  { %v127_v58 = vmul.u32 %v125_v52, %v101_v46  ;;  %v128_v59 = vmul.u32 %v126_v53, %v101_v46  ;;  %v129_v60 = vmul.u32 %v125_v52, %v102_v47  ;;  %v130_v0 = vmul.u32 %v126_v53, %v102_v47 }
  0x2d   :  { %v105_v55 = vmul.u32 %v103_v50, %v101_v46  ;;  %v106_v56 = vmul.u32 %v104_v51, %v101_v46  ;;  %v107_v57 = vmul.u32 %v103_v50, %v102_v47  ;;  %v108_v61 = vmul.u32 %v104_v51, %v102_v47 }
  0x2e   :  { %v131_v1 = vshll.u32 %v128_v59, 16  ;;  %v133_v2 = vshll.u32 %v129_v60, 16  ;;  %v132_v15 = vshrl.u32 %v128_v59, 16  ;;  %v134_v22 = vshrl.u32 %v129_v60, 16 }
  0x2f   :  { %v109_v62 = vshll.u32 %v106_v56, 16  ;;  %v111_v63 = vshll.u32 %v107_v57, 16  ;;  %v110_v11 = vshrl.u32 %v106_v56, 16  ;;  %v112_v19 = vshrl.u32 %v107_v57, 16 }
  0x30   :  { %vm135_vm6 = vc.u32 %v127_v58, %v131_v1  ;;  %v137_v10 = vadd.s32 %v131_v1, %v127_v58 }
  0x31   :  { %vm113_vm5 = vc.u32 %v105_v55, %v109_v62  ;;  %v115_v4 = vadd.s32 %v109_v62, %v105_v55  ;;  %v136_v13 = vsel %vm135_vm6, 1, %v330_v7 }
  0x32   :  { %v114_v8 = vsel %vm113_vm5, 1, %v330_v7  ;;  %v138_v17 = vadd.s32 %v136_v13, %v130_v0  ;;  %vm139_vm8 = vc.u32 %v137_v10, %v133_v2  ;;  %v141_v25 = vadd.s32 %v137_v10, %v133_v2 }
  0x33   :  { %v116_v12 = vadd.s32 %v114_v8, %v108_v61  ;;  %vm117_vm7 = vc.u32 %v115_v4, %v111_v63  ;;  %v140_v21 = vsel %vm139_vm8, 1, %v330_v7 }
  0x34   :  { %v118_v14 = vsel %vm117_vm7, 1, %v330_v7  ;;  %v142_v23 = vadd.s32 %v140_v21, %v138_v17 }
  0x35   :  { %v120_v20 = vadd.s32 %v118_v14, %v116_v12 }
  0x36   :  { %v143_v27 = vadd.s32 %v142_v23, %v132_v15 }
  0x37   :  { %v121_v24 = vadd.s32 %v120_v20, %v110_v11 }
  0x38   :  { %v144_v29 = vadd.s32 %v143_v27, %v134_v22 }
  0x39   :  { %v122_v28 = vadd.s32 %v121_v24, %v112_v19 }
  0x3a   :  { %v148_v31 = vadd.s32 1, %v144_v29 }
  0x3b   :  { %vm147_vm9 = vc.u32 %v122_v28, %v141_v25  ;;  %v146_v16 = vadd.s32 %v141_v25, %v122_v28 }
  0x3c   :  { %v149_v32 = vsel %vm147_vm9, %v148_v31, %v144_v29 }
  0x3d   :  { %v150_v33 = vadd.s32 %v149_v32, %v145_v30 }
  0x3f   :  { %v151_v35 = vadd.s32 536870912, %v150_v33 }
  0x41   :  { %v152_v36 = vshrl.u32 %v151_v35, 30 }
  0x43   :  { %v153_v37 = vshll.u32 %v152_v36, 30  ;;  %v176_v54 = vsub.s32 4, %v152_v36 }
  0x45   :  { %v154_v38 = vsub.s32 %v150_v33, %v153_v37  ;;  %v177_v57 = vsel %vm54_vm12, %v176_v54, %v152_v36 }
  0x46   :  { %v179_v60 = vsel %vm53_vm13, 0, %v177_v57 }
  0x47   :  { %vm155_vm10 = vcmp.lt.s32.totalorder %v154_v38, 0  ;;  %v156_v39 = vsub.s32 0, %v154_v38  ;;  %v196_v1 = vadd.s32 3, %v179_v60 }
  0x49   :  { %v157_v40 = vsel %vm155_vm10, %v156_v39, %v154_v38  ;;  %v197_v7 = vand.u32 3, %v196_v1 }
  0x4a   :  { %v158_v41 = vclz %v157_v40 }
  0x4b   :  { %vm202_vm14 = vcmp.eq.s32.totalorder %v197_v7, 2  ;;  %vm199_vm15 = vcmp.eq.s32.totalorder %v197_v7, 0  ;;  %vm198_vm0 = vcmp.lt.s32.totalorder %v197_v7, 2 }
  0x4c   :  { %v230_v42 = vadd.s32 4294967294, %v158_v41 }
  0x4e   :  { %vm231_vm11 = vcmp.lt.s32.totalorder %v230_v42, 0 }
  0x4f   :  { %v161_v43 = vsel %vm231_vm11, 0, %v230_v42 }
  0x50   :  { %v162_v44 = vsub.s32 32, %v161_v43  ;;  %v163_v45 = vshll.u32 %v154_v38, %v161_v43  ;;  %v166_v46 = vsub.s32 4294967266, %v161_v43 }
  0x52   :  { %v164_v34 = vshrl.u32 %v146_v16, %v162_v44  ;;  %v167_v47 = vadd.s32 127, %v166_v46 }
  0x54   :  { %v165_v48 = vor.u32 %v164_v34, %v163_v45  ;;  %v168_v49 = vshll.u32 %v167_v47, 23 }
  0x56   :  { %v169_v50 = vor.u32 4788187, %v168_v49  ;;  %v172_v51 = vcvt.s32.f32 %v165_v48 }
  0x58   :  { %v170_v52 = vand.u32 2147483647, %v169_v50 }
  0x5a   :  { %v173_v53 = vmul.f32 %v172_v51, %v170_v52 }
  0x5c   :  { %v174_v55 = vxor.u32 2147483648, %v173_v53 }
  0x5e   :  { %v175_v56 = vsel %vm54_vm12, %v174_v55, %v173_v53 }
  0x5f   :  { %v178_v58 = vsel %vm53_vm13, %v353_v6, %v175_v56 }
  0x60   :  { %v180_v59 = vmul.f32 %v178_v58, %v178_v58 }
  0x62   :  { %v181_v61 = vmul.f32 -0.001358992, %v180_v59  ;;  %v188_v62 = vmul.f32 -0.00019511016, %v180_v59 }
  0x64   :  { %v182_v63 = vadd.f32 0.041655596, %v181_v61  ;;  %v189_v0 = vadd.f32 0.008332121, %v188_v62 }
  0x66   :  { %v183_v2 = vmul.f32 %v182_v63, %v180_v59  ;;  %v190_v3 = vmul.f32 %v189_v0, %v180_v59 }
  0x68   :  { %v184_v4 = vadd.f32 -0.4999988, %v183_v2  ;;  %v191_v5 = vadd.f32 -0.16666654, %v190_v3 }
  0x6a   :  { %v185_v8 = vmul.f32 %v184_v4, %v180_v59  ;;  %v192_v10 = vmul.f32 %v191_v5, %v180_v59 }
  0x6c   :  { %v186_v9 = vadd.f32 1.0, %v185_v8  ;;  %v193_v11 = vadd.f32 1.0, %v192_v10 }
  0x6e   :  { %v194_v12 = vmul.f32 %v193_v11, %v178_v58  ;;  %v203_v13 = vxor.u32 2147483648, %v186_v9 }
  0x70   :  { %v200_v14 = vxor.u32 2147483648, %v194_v12  ;;  %v204_v15 = vsel %vm202_vm14, %v203_v13, %v194_v12 }
  0x72   :  { %v201_v17 = vsel %vm199_vm15, %v186_v9, %v200_v14 }
  0x73   :  { %v205_v19 = vsel %vm198_vm0, %v201_v17, %v204_v15 }
  0x74   :  { %v206_v20 = vsel %vm195_vm1, nan, %v205_v19 }
  0x75   :  { %v208_v21 = vadd.f32 %v207_v18, %v206_v20 }
  0x77   :  { %210 = vst.msk [vmem:[#allocation7] sm:$0xff] %vm209_vm2, %v208_v21 }
  0x78   :  { %221 = dma.vmem_to_hbm [thread:$0]  %s217_s1, 128, %s219_s21, [#allocation4]  }
  0x79   :  { %320 = dma.done.wait [#allocation4], 128  }
  0x7a   :  { %321 = vsyncadd [#allocation4], 4294967168 }
  0x7b   :  { %226 = vsyncpa [#allocation3], 1 }
  0x7c   :  { %227 = vsyncpa [#allocation6], 1 }
  0x7d   :  { %228 = vsyncpa [#allocation4], 1 }

</bundles_post_ra>
